<compile_context>
chip_gen: v7x
topology: tpu7x:2x2x1
jax: 0.10.0
libtpu: 0.0.40
codegen_flags: <defaults>
</compile_context>

<pallas_src>
import functools

import jax
import jax.numpy as jnp
from jax import lax
from jax.experimental import pallas as pl
from jax.experimental.pallas import tpu as pltpu

_LOG2_E = 1.4426950408889634


def _qkv_proj_kernel(x_ref, w_ref, qkv_ref):
    # x_ref: (1, C, tn)   w_ref: (3*H*Dh, C)   qkv_ref: (1, 3*H*Dh, tn)
    qkv_ref[0] = jnp.dot(w_ref[...], x_ref[0],
                         preferred_element_type=jnp.float32).astype(qkv_ref.dtype)


def _flash_attn_kernel(q_ref, k_ref, v_ref, wout_ref, bias_ref, y_ref,
                       qt_sc, m_sc, l_sc, acc_sc, y_sc, *, heads):
    # q_ref: (1, Dh, tq)   k/v_ref: (1, Dh, tk)   wout_ref: (H, C, Dh)
    # bias_ref: (C, 1)     y_ref: (1, C, tq)
    # scratch: qt (tq, Dh) f32, m/l (tq, 1) f32, acc (tq, Dh) f32, y (C, tq) f32
    h = pl.program_id(2)
    ki = pl.program_id(3)
    nk = pl.num_programs(3)

    @pl.when(ki == 0)
    def _init_head():
        # q changes only with (b, q-tile, head): transpose it once per head.
        qt_sc[...] = jnp.transpose(q_ref[0].astype(jnp.float32), (1, 0))  # (tq, Dh)
        m_sc[...] = jnp.full(m_sc.shape, -jnp.inf, m_sc.dtype)
        l_sc[...] = jnp.zeros(l_sc.shape, l_sc.dtype)
        acc_sc[...] = jnp.zeros(acc_sc.shape, acc_sc.dtype)

    @pl.when(jnp.logical_and(h == 0, ki == 0))
    def _init_out():
        y_sc[...] = jnp.zeros(y_sc.shape, y_sc.dtype)

    k = k_ref[0]                                       # (Dh, tk)
    v = v_ref[0]                                       # (Dh, tk)

    # Scores in log2 domain: scale * log2(e) is folded into the q weights.
    s = jnp.dot(qt_sc[...].astype(k.dtype), k,
                preferred_element_type=jnp.float32)    # (tq, tk), native MXU dims

    m_prev = m_sc[...]
    m_new = jnp.maximum(m_prev, jnp.max(s, axis=-1, keepdims=True))
    alpha = jnp.exp2(m_prev - m_new)
    p = jnp.exp2(s - m_new)                            # (tq, tk)
    l_sc[...] = alpha * l_sc[...] + jnp.sum(p, axis=-1, keepdims=True)
    acc_sc[...] = alpha * acc_sc[...] + lax.dot_general(
        p.astype(v.dtype), v, (((1,), (1,)), ((), ())),
        preferred_element_type=jnp.float32)            # (tq, Dh)
    m_sc[...] = m_new

    # Per-head epilogue: exact normalization (runs once per head per q-tile)
    # and fused output 1x1-conv contribution of this head.
    @pl.when(ki == nk - 1)
    def _finalize_head():
        o_h = acc_sc[...] * pl.reciprocal(l_sc[...], approx=False)   # (tq, Dh)
        w_h = wout_ref[h].astype(jnp.float32)                        # (C, Dh)
        y_sc[...] += lax.dot_general(w_h, o_h, (((1,), (1,)), ((), ())),
                                     preferred_element_type=jnp.float32)  # (C, tq)

    @pl.when(jnp.logical_and(h == heads - 1, ki == nk - 1))
    def _write_out():
        y_ref[0] = (y_sc[...] + bias_ref[...].astype(jnp.float32)).astype(y_ref.dtype)


def _pick_tile(n, candidates):
    for t in candidates:
        if n >= t and n % t == 0:
            return t
    # TODO(synk): mask ragged tails instead of falling back to one full-length tile.
    return n


@functools.partial(jax.jit, static_argnames=("heads", "dim_head", "qkv_dtype"))
def attention_pallas(x, w_qkv, w_out, b_out, *, heads, dim_head, qkv_dtype=None):
    """x: (B, C, N). w_qkv: (3*H*Dh, C, 1). w_out: (C, H*Dh, 1). b_out: (C,)."""
    B, C, N = x.shape
    Dh = dim_head
    hidden = heads * Dh
    dtype = x.dtype
    qkv_dtype = jnp.dtype(dtype) if qkv_dtype is None else jnp.dtype(qkv_dtype)

    # Host-side weight prep (tiny tensors): fold softmax scale and log2(e)
    # (exp2 softmax) into the q rows; keep one fused (3*hidden, C) matrix.
    scale = (float(Dh) ** -0.5) * _LOG2_E
    w = w_qkv[:, :, 0]                                                   # (3*hidden, C)
    w_all = jnp.concatenate([w[:hidden] * scale, w[hidden:]], axis=0)    # (3*hidden, C)
    wout = w_out[:, :, 0].reshape(C, heads, Dh).transpose(1, 0, 2)       # (H, C, Dh)
    bias = b_out.reshape(C, 1)

    tn = _pick_tile(N, (1024, 512, 256, 128))  # projection N-tile
    tq = _pick_tile(N, (256, 128))             # flash q tile
    tk = _pick_tile(N, (512, 256, 128))        # flash kv tile

    # ---- 1) fused qkv projection: (B, C, N) -> (B, 3*hidden, N), N-last ----
    qkv = pl.pallas_call(
        _qkv_proj_kernel,
        out_shape=jax.ShapeDtypeStruct((B, 3 * hidden, N), qkv_dtype),
        grid=(B, N // tn),
        in_specs=[
            pl.BlockSpec((1, C, tn), lambda b, nt: (b, 0, nt)),
            pl.BlockSpec((3 * hidden, C), lambda b, nt: (0, 0)),
        ],
        out_specs=pl.BlockSpec((1, 3 * hidden, tn), lambda b, nt: (b, 0, nt)),
        compiler_params=pltpu.CompilerParams(
            dimension_semantics=("parallel", "parallel"),
            vmem_limit_bytes=32 * 1024 * 1024),
        cost_estimate=pl.CostEstimate(
            flops=int(2 * B * N * C * 3 * hidden),
            transcendentals=0,
            bytes_accessed=int(x.dtype.itemsize * B * C * N
                               + w_all.dtype.itemsize * 3 * hidden * C
                               + qkv_dtype.itemsize * B * 3 * hidden * N)),
    )(x, w_all)

    # ---- 2) flash attention + fused output projection -> (B, C, N) ----
    grid = (B, N // tq, heads, N // tk)
    y = pl.pallas_call(
        functools.partial(_flash_attn_kernel, heads=heads),
        out_shape=jax.ShapeDtypeStruct((B, C, N), dtype),
        grid=grid,
        in_specs=[
            # q / k / v are channel slices of the same (B, 3*hidden, N) slab.
            pl.BlockSpec((1, Dh, tq), lambda b, qi, h, ki: (b, h, qi)),
            pl.BlockSpec((1, Dh, tk), lambda b, qi, h, ki: (b, heads + h, ki)),
            pl.BlockSpec((1, Dh, tk), lambda b, qi, h, ki: (b, 2 * heads + h, ki)),
            pl.BlockSpec((heads, C, Dh), lambda b, qi, h, ki: (0, 0, 0)),  # resident
            pl.BlockSpec((C, 1), lambda b, qi, h, ki: (0, 0)),
        ],
        out_specs=pl.BlockSpec((1, C, tq), lambda b, qi, h, ki: (b, 0, qi)),
        scratch_shapes=[
            pltpu.VMEM((tq, Dh), jnp.float32),   # transposed q (once per head)
            pltpu.VMEM((tq, 1), jnp.float32),    # running max (log2 domain)
            pltpu.VMEM((tq, 1), jnp.float32),    # running denominator
            pltpu.VMEM((tq, Dh), jnp.float32),   # per-head output accumulator
            pltpu.VMEM((C, tq), jnp.float32),    # fused output-projection accumulator
        ],
        compiler_params=pltpu.CompilerParams(
            dimension_semantics=("parallel", "parallel", "arbitrary", "arbitrary"),
            vmem_limit_bytes=32 * 1024 * 1024),
        cost_estimate=pl.CostEstimate(
            flops=int(4 * B * heads * N * N * Dh + 2 * B * heads * N * Dh * C),
            transcendentals=int(B * heads * N * N),
            bytes_accessed=int(qkv_dtype.itemsize * (B * heads * N * Dh
                                                     + 2 * B * (N // tq) * heads * N * Dh)
                               + 4 * (heads * C * Dh + C)
                               + x.dtype.itemsize * B * C * N)),
    )(qkv, qkv, qkv, wout, bias)

    return y


def attention_reference(x, w_qkv, w_out, b_out, *, heads, dim_head):
    """Pure-JAX reference matching the PyTorch forward."""
    B, C, N = x.shape
    hidden = heads * dim_head
    scale = float(dim_head) ** -0.5
    hp = jax.lax.Precision.HIGHEST

    qkv = jnp.einsum('bcn,oc->bon', x, w_qkv[:, :, 0], precision=hp)      # (B, 3*hidden, N)
    q, k, v = jnp.split(qkv, 3, axis=1)
    q = q.reshape(B, heads, dim_head, N) * scale
    k = k.reshape(B, heads, dim_head, N)
    v = v.reshape(B, heads, dim_head, N)

    sim = jnp.einsum('bhdi,bhdj->bhij', q, k, precision=hp)
    attn = jax.nn.softmax(sim, axis=-1)
    out = jnp.einsum('bhij,bhdj->bhid', attn, v, precision=hp)            # (B, H, N, Dh)
    out = jnp.transpose(out, (0, 1, 3, 2)).reshape(B, hidden, N)
    y = jnp.einsum('bcn,oc->bon', out, w_out[:, :, 0], precision=hp) + b_out[None, :, None]
    return y


if __name__ == "__main__":
    HEADS, DIM_HEAD = 4, 32
    HIDDEN = HEADS * DIM_HEAD

    def make_inputs(B, DIM, N):
        key = jax.random.PRNGKey(0)
        kx, kq, ko, kb = jax.random.split(key, 4)
        x = jax.random.normal(kx, (B, DIM, N), dtype=jnp.float32)
        w_qkv = jax.random.normal(kq, (3 * HIDDEN, DIM, 1), dtype=jnp.float32) / jnp.sqrt(DIM)
        w_out = jax.random.normal(ko, (DIM, HIDDEN, 1), dtype=jnp.float32) / jnp.sqrt(HIDDEN)
        b_out = 0.1 * jax.random.normal(kb, (DIM,), dtype=jnp.float32)
        return x, w_qkv, w_out, b_out

    # Small single-tile case and a larger one exercising multi-q-tile /
    # multi-kv-step online softmax plus multi-head output accumulation.
    for (B, DIM, N) in [(2, 8, 16), (2, 8, 1024)]:
        x, w_qkv, w_out, b_out = make_inputs(B, DIM, N)
        y = attention_pallas(x, w_qkv, w_out, b_out, heads=HEADS, dim_head=DIM_HEAD)
        y = jax.block_until_ready(y)
        y_ref = attention_reference(x, w_qkv, w_out, b_out, heads=HEADS, dim_head=DIM_HEAD)
        assert y.shape == (B, DIM, N)
        assert jnp.allclose(y, y_ref, rtol=1e-2, atol=1e-2), f"f32 mismatch vs reference (N={N})"

    # bf16 q/k/v intermediates (recommended MXU path on v6e/v7x); f32 softmax
    # statistics / accumulation keep the error small.
    B, DIM, N = 2, 8, 1024
    x, w_qkv, w_out, b_out = make_inputs(B, DIM, N)
    y = attention_pallas(x, w_qkv, w_out, b_out, heads=HEADS, dim_head=DIM_HEAD,
                         qkv_dtype=jnp.bfloat16)
    y = jax.block_until_ready(y)
    y_ref = attention_reference(x, w_qkv, w_out, b_out, heads=HEADS, dim_head=DIM_HEAD)
    assert jnp.allclose(y, y_ref, rtol=3e-2, atol=3e-2), "bf16 mismatch vs reference"

    print("KERNEL_OK")
</pallas_src>

<mosaic_0001>
module attributes {stable_mosaic.version = 11 : i64} {
  func.func @_qkv_proj_kernel(%arg0: i32, %arg1: i32, %arg2: memref<1x8x16xf32, #tpu.memory_space<vmem>>, %arg3: memref<384x8xf32, #tpu.memory_space<vmem>>, %arg4: memref<1x384x16xf32, #tpu.memory_space<vmem>>) attributes {dimension_semantics = [#tpu.dimension_semantics<parallel>, #tpu.dimension_semantics<parallel>], iteration_bounds = array<i64: 2, 1>, scalar_prefetch = 0 : i64, scratch_operands = 0 : i64, tpu.core_type = #tpu.core_type<tc>, window_params = [{transform_indices = @transform_0, window_bounds = array<i64: 1, 8, 16>}, {pipeline_mode = #tpu.pipeline_mode<synchronous>, transform_indices = @transform_1, window_bounds = array<i64: 384, 8>}, {transform_indices = @transform_2, window_bounds = array<i64: 1, 384, 16>}]} {
    %c0 = arith.constant 0 : index
    %c0_0 = arith.constant 0 : index
    %0 = vector.load %arg3[%c0, %c0_0] : memref<384x8xf32, #tpu.memory_space<vmem>>, vector<384x8xf32>
    %c0_1 = arith.constant 0 : index
    %c0_2 = arith.constant 0 : index
    %c0_3 = arith.constant 0 : index
    %1 = vector.load %arg2[%c0_1, %c0_2, %c0_3] : memref<1x8x16xf32, #tpu.memory_space<vmem>>, vector<1x8x16xf32>
    %2 = vector.shape_cast %1 : vector<1x8x16xf32> to vector<8x16xf32>
    %cst = arith.constant dense<0.000000e+00> : vector<384x16xf32>
    %3 = tpu.matmul %0, %2, %cst {dimension_numbers = #tpu.dot_dimension_numbers<[1], [0], [0], [1], [0, 0, 1, 1], [], []>} : vector<384x8xf32>, vector<8x16xf32>, vector<384x16xf32> -> vector<384x16xf32>
    %c0_4 = arith.constant 0 : index
    %c0_5 = arith.constant 0 : index
    %c0_6 = arith.constant 0 : index
    %4 = vector.load %arg4[%c0_4, %c0_5, %c0_6] : memref<1x384x16xf32, #tpu.memory_space<vmem>>, vector<1x384x16xf32>
    %5 = vector.shape_cast %4 : vector<1x384x16xf32> to vector<384x16xf32>
    %6 = vector.shape_cast %3 : vector<384x16xf32> to vector<1x384x16xf32>
    tpu.vector_store %arg4[%c0_4, %c0_5, %c0_6], %6 {strides = array<i32>} : memref<1x384x16xf32, #tpu.memory_space<vmem>>, vector<1x384x16xf32>,
    return
  }
  func.func @transform_0(%arg0: i32, %arg1: i32) -> (i32, i32, i32) {
    %c0_i32 = arith.constant 0 : i32
    %c0_i32_0 = arith.constant 0 : i32
    return %arg0, %c0_i32, %arg1 : i32, i32, i32
  }
  func.func @transform_1(%arg0: i32, %arg1: i32) -> (i32, i32) {
    %c0_i32 = arith.constant 0 : i32
    %c0_i32_0 = arith.constant 0 : i32
    %c0_i32_1 = arith.constant 0 : i32
    return %c0_i32, %c0_i32_0 : i32, i32
  }
  func.func @transform_2(%arg0: i32, %arg1: i32) -> (i32, i32, i32) {
    %c0_i32 = arith.constant 0 : i32
    %c0_i32_0 = arith.constant 0 : i32
    return %arg0, %c0_i32, %arg1 : i32, i32, i32
  }
}

module attributes {stable_mosaic.version = 11 : i64} {
  func.func @_flash_attn_kernel(%arg0: i32, %arg1: i32, %arg2: i32, %arg3: i32, %arg4: memref<1x32x16xf32, #tpu.memory_space<vmem>>, %arg5: memref<1x32x16xf32, #tpu.memory_space<vmem>>, %arg6: memref<1x32x16xf32, #tpu.memory_space<vmem>>, %arg7: memref<4x8x32xf32, #tpu.memory_space<vmem>>, %arg8: memref<8x1xf32, #tpu.memory_space<vmem>>, %arg9: memref<1x8x16xf32, #tpu.memory_space<vmem>>, %arg10: memref<16x32xf32, #tpu.memory_space<vmem>>, %arg11: memref<16x1xf32, #tpu.memory_space<vmem>>, %arg12: memref<16x1xf32, #tpu.memory_space<vmem>>, %arg13: memref<16x32xf32, #tpu.memory_space<vmem>>, %arg14: memref<8x16xf32, #tpu.memory_space<vmem>>) attributes {dimension_semantics = [#tpu.dimension_semantics<parallel>, #tpu.dimension_semantics<parallel>, #tpu.dimension_semantics<arbitrary>, #tpu.dimension_semantics<arbitrary>], iteration_bounds = array<i64: 2, 1, 4, 1>, scalar_prefetch = 0 : i64, scratch_operands = 5 : i64, tpu.core_type = #tpu.core_type<tc>, window_params = [{transform_indices = @transform_0, window_bounds = array<i64: 1, 32, 16>}, {transform_indices = @transform_1, window_bounds = array<i64: 1, 32, 16>}, {transform_indices = @transform_2, window_bounds = array<i64: 1, 32, 16>}, {pipeline_mode = #tpu.pipeline_mode<synchronous>, transform_indices = @transform_3, window_bounds = array<i64: 4, 8, 32>}, {pipeline_mode = #tpu.pipeline_mode<synchronous>, transform_indices = @transform_4, window_bounds = array<i64: 8, 1>}, {transform_indices = @transform_5, window_bounds = array<i64: 1, 8, 16>}]} {
    %c0_i32 = arith.constant 0 : i32
    %0 = arith.cmpi eq, %arg3, %c0_i32 : i32
    %1 = arith.extui %0 : i1 to i32
    %c0_i32_0 = arith.constant 0 : i32
    %2 = arith.cmpi ne, %1, %c0_i32_0 : i32
    scf.if %2 {
      %c0_30 = arith.constant 0 : index
      %c0_31 = arith.constant 0 : index
      %c0_32 = arith.constant 0 : index
      %44 = vector.load %arg4[%c0_30, %c0_31, %c0_32] : memref<1x32x16xf32, #tpu.memory_space<vmem>>, vector<1x32x16xf32>
      %45 = vector.shape_cast %44 : vector<1x32x16xf32> to vector<32x16xf32>
      %46 = tpu.transpose %45, [1, 0] : vector<32x16xf32> -> vector<16x32xf32>
      %c0_33 = arith.constant 0 : index
      %c0_34 = arith.constant 0 : index
      %47 = vector.load %arg10[%c0_33, %c0_34] : memref<16x32xf32, #tpu.memory_space<vmem>>, vector<16x32xf32>
      tpu.vector_store %arg10[%c0_33, %c0_34], %46 {strides = array<i32>} : memref<16x32xf32, #tpu.memory_space<vmem>>, vector<16x32xf32>,
      %cst_35 = arith.constant 0xFF800000 : f32
      %48 = vector.broadcast %cst_35 : f32 to vector<16x1xf32>
      %c0_36 = arith.constant 0 : index
      %c0_37 = arith.constant 0 : index
      %49 = vector.load %arg11[%c0_36, %c0_37] : memref<16x1xf32, #tpu.memory_space<vmem>>, vector<16x1xf32>
      tpu.vector_store %arg11[%c0_36, %c0_37], %48 {strides = array<i32>} : memref<16x1xf32, #tpu.memory_space<vmem>>, vector<16x1xf32>,
      %cst_38 = arith.constant 0.000000e+00 : f32
      %50 = vector.broadcast %cst_38 : f32 to vector<16x1xf32>
      %c0_39 = arith.constant 0 : index
      %c0_40 = arith.constant 0 : index
      %51 = vector.load %arg12[%c0_39, %c0_40] : memref<16x1xf32, #tpu.memory_space<vmem>>, vector<16x1xf32>
      tpu.vector_store %arg12[%c0_39, %c0_40], %50 {strides = array<i32>} : memref<16x1xf32, #tpu.memory_space<vmem>>, vector<16x1xf32>,
      %cst_41 = arith.constant 0.000000e+00 : f32
      %52 = vector.broadcast %cst_41 : f32 to vector<16x32xf32>
      %c0_42 = arith.constant 0 : index
      %c0_43 = arith.constant 0 : index
      %53 = vector.load %arg13[%c0_42, %c0_43] : memref<16x32xf32, #tpu.memory_space<vmem>>, vector<16x32xf32>
      tpu.vector_store %arg13[%c0_42, %c0_43], %52 {strides = array<i32>} : memref<16x32xf32, #tpu.memory_space<vmem>>, vector<16x32xf32>,
    } else {
    }
    %c0_i32_1 = arith.constant 0 : i32
    %3 = arith.cmpi eq, %arg2, %c0_i32_1 : i32
    %c0_i32_2 = arith.constant 0 : i32
    %4 = arith.cmpi eq, %arg3, %c0_i32_2 : i32
    %5 = arith.andi %3, %4 : i1
    %6 = arith.extui %5 : i1 to i32
    %c0_i32_3 = arith.constant 0 : i32
    %7 = arith.cmpi ne, %6, %c0_i32_3 : i32
    scf.if %7 {
      %cst_30 = arith.constant 0.000000e+00 : f32
      %44 = vector.broadcast %cst_30 : f32 to vector<8x16xf32>
      %c0_31 = arith.constant 0 : index
      %c0_32 = arith.constant 0 : index
      %45 = vector.load %arg14[%c0_31, %c0_32] : memref<8x16xf32, #tpu.memory_space<vmem>>, vector<8x16xf32>
      tpu.vector_store %arg14[%c0_31, %c0_32], %44 {strides = array<i32>} : memref<8x16xf32, #tpu.memory_space<vmem>>, vector<8x16xf32>,
    } else {
    }
    %c0 = arith.constant 0 : index
    %c0_4 = arith.constant 0 : index
    %c0_5 = arith.constant 0 : index
    %8 = vector.load %arg5[%c0, %c0_4, %c0_5] : memref<1x32x16xf32, #tpu.memory_space<vmem>>, vector<1x32x16xf32>
    %9 = vector.shape_cast %8 : vector<1x32x16xf32> to vector<32x16xf32>
    %c0_6 = arith.constant 0 : index
    %c0_7 = arith.constant 0 : index
    %c0_8 = arith.constant 0 : index
    %10 = vector.load %arg6[%c0_6, %c0_7, %c0_8] : memref<1x32x16xf32, #tpu.memory_space<vmem>>, vector<1x32x16xf32>
    %11 = vector.shape_cast %10 : vector<1x32x16xf32> to vector<32x16xf32>
    %c0_9 = arith.constant 0 : index
    %c0_10 = arith.constant 0 : index
    %12 = vector.load %arg10[%c0_9, %c0_10] : memref<16x32xf32, #tpu.memory_space<vmem>>, vector<16x32xf32>
    %cst = arith.constant dense<0.000000e+00> : vector<16x16xf32>
    %13 = tpu.matmul %12, %9, %cst {dimension_numbers = #tpu.dot_dimension_numbers<[1], [0], [0], [1], [0, 0, 1, 1], [], []>} : vector<16x32xf32>, vector<32x16xf32>, vector<16x16xf32> -> vector<16x16xf32>
    %c0_11 = arith.constant 0 : index
    %c0_12 = arith.constant 0 : index
    %14 = vector.load %arg11[%c0_11, %c0_12] : memref<16x1xf32, #tpu.memory_space<vmem>>, vector<16x1xf32>
    %cst_13 = arith.constant dense<0xFF800000> : vector<16xf32>
    %15 = vector.multi_reduction <maximumf>, %13, %cst_13 [1] : vector<16x16xf32> to vector<16xf32>
    %16 = vector.shape_cast %15 : vector<16xf32> to vector<16x1xf32>
    %17 = arith.maximumf %14, %16 : vector<16x1xf32>
    %18 = arith.subf %14, %17 : vector<16x1xf32>
    %19 = math.exp2 %18 : vector<16x1xf32>
    %20 = vector.broadcast %17 : vector<16x1xf32> to vector<16x16xf32>
    %21 = arith.subf %13, %20 : vector<16x16xf32>
    %22 = math.exp2 %21 : vector<16x16xf32>
    %c0_14 = arith.constant 0 : index
    %c0_15 = arith.constant 0 : index
    %23 = vector.load %arg12[%c0_14, %c0_15] : memref<16x1xf32, #tpu.memory_space<vmem>>, vector<16x1xf32>
    %24 = arith.mulf %19, %23 : vector<16x1xf32>
    %cst_16 = arith.constant dense<0.000000e+00> : vector<16xf32>
    %25 = vector.multi_reduction <add>, %22, %cst_16 [1] : vector<16x16xf32> to vector<16xf32>
    %26 = vector.shape_cast %25 : vector<16xf32> to vector<16x1xf32>
    %27 = arith.addf %24, %26 : vector<16x1xf32>
    %c0_17 = arith.constant 0 : index
    %c0_18 = arith.constant 0 : index
    %28 = vector.load %arg12[%c0_17, %c0_18] : memref<16x1xf32, #tpu.memory_space<vmem>>, vector<16x1xf32>
    tpu.vector_store %arg12[%c0_17, %c0_18], %27 {strides = array<i32>} : memref<16x1xf32, #tpu.memory_space<vmem>>, vector<16x1xf32>,
    %c0_19 = arith.constant 0 : index
    %c0_20 = arith.constant 0 : index
    %29 = vector.load %arg13[%c0_19, %c0_20] : memref<16x32xf32, #tpu.memory_space<vmem>>, vector<16x32xf32>
    %30 = vector.broadcast %19 : vector<16x1xf32> to vector<16x32xf32>
    %31 = arith.mulf %30, %29 : vector<16x32xf32>
    %cst_21 = arith.constant dense<0.000000e+00> : vector<16x32xf32>
    %32 = tpu.matmul %22, %11, %cst_21 {dimension_numbers = #tpu.dot_dimension_numbers<[1], [1], [0], [0], [0, 0, 1, 0], [], []>} : vector<16x16xf32>, vector<32x16xf32>, vector<16x32xf32> -> vector<16x32xf32>
    %33 = arith.addf %31, %32 : vector<16x32xf32>
    %c0_22 = arith.constant 0 : index
    %c0_23 = arith.constant 0 : index
    %34 = vector.load %arg13[%c0_22, %c0_23] : memref<16x32xf32, #tpu.memory_space<vmem>>, vector<16x32xf32>
    tpu.vector_store %arg13[%c0_22, %c0_23], %33 {strides = array<i32>} : memref<16x32xf32, #tpu.memory_space<vmem>>, vector<16x32xf32>,
    %c0_24 = arith.constant 0 : index
    %c0_25 = arith.constant 0 : index
    %35 = vector.load %arg11[%c0_24, %c0_25] : memref<16x1xf32, #tpu.memory_space<vmem>>, vector<16x1xf32>
    tpu.vector_store %arg11[%c0_24, %c0_25], %17 {strides = array<i32>} : memref<16x1xf32, #tpu.memory_space<vmem>>, vector<16x1xf32>,
    %c0_i32_26 = arith.constant 0 : i32
    %36 = arith.cmpi eq, %arg3, %c0_i32_26 : i32
    %37 = arith.extui %36 : i1 to i32
    %c0_i32_27 = arith.constant 0 : i32
    %38 = arith.cmpi ne, %37, %c0_i32_27 : i32
    scf.if %38 {
      %c0_30 = arith.constant 0 : index
      %c0_31 = arith.constant 0 : index
      %44 = vector.load %arg13[%c0_30, %c0_31] : memref<16x32xf32, #tpu.memory_space<vmem>>, vector<16x32xf32>
      %c0_32 = arith.constant 0 : index
      %c0_33 = arith.constant 0 : index
      %45 = vector.load %arg12[%c0_32, %c0_33] : memref<16x1xf32, #tpu.memory_space<vmem>>, vector<16x1xf32>
      %46 = tpu.reciprocal %45 : vector<16x1xf32> -> vector<16x1xf32>
      %47 = vector.broadcast %46 : vector<16x1xf32> to vector<16x32xf32>
      %48 = arith.mulf %44, %47 : vector<16x32xf32>
      %49 = arith.index_cast %arg2 : i32 to index
      %c0_34 = arith.constant 0 : index
      %c0_35 = arith.constant 0 : index
      %50 = vector.load %arg7[%49, %c0_34, %c0_35] : memref<4x8x32xf32, #tpu.memory_space<vmem>>, vector<1x8x32xf32>
      %51 = vector.shape_cast %50 : vector<1x8x32xf32> to vector<8x32xf32>
      %c0_36 = arith.constant 0 : index
      %c0_37 = arith.constant 0 : index
      %52 = vector.load %arg14[%c0_36, %c0_37] : memref<8x16xf32, #tpu.memory_space<vmem>>, vector<8x16xf32>
      %cst_38 = arith.constant dense<0.000000e+00> : vector<8x16xf32>
      %53 = tpu.matmul %51, %48, %cst_38 {dimension_numbers = #tpu.dot_dimension_numbers<[1], [1], [0], [0], [0, 0, 1, 0], [], []>} : vector<8x32xf32>, vector<16x32xf32>, vector<8x16xf32> -> vector<8x16xf32>
      %54 = arith.addf %52, %53 : vector<8x16xf32>
      %c0_39 = arith.constant 0 : index
      %c0_40 = arith.constant 0 : index
      %55 = vector.load %arg14[%c0_39, %c0_40] : memref<8x16xf32, #tpu.memory_space<vmem>>, vector<8x16xf32>
      tpu.vector_store %arg14[%c0_39, %c0_40], %54 {strides = array<i32>} : memref<8x16xf32, #tpu.memory_space<vmem>>, vector<8x16xf32>,
    } else {
    }
    %c3_i32 = arith.constant 3 : i32
    %39 = arith.cmpi eq, %arg2, %c3_i32 : i32
    %c0_i32_28 = arith.constant 0 : i32
    %40 = arith.cmpi eq, %arg3, %c0_i32_28 : i32
    %41 = arith.andi %39, %40 : i1
    %42 = arith.extui %41 : i1 to i32
    %c0_i32_29 = arith.constant 0 : i32
    %43 = arith.cmpi ne, %42, %c0_i32_29 : i32
    scf.if %43 {
      %c0_30 = arith.constant 0 : index
      %c0_31 = arith.constant 0 : index
      %44 = vector.load %arg14[%c0_30, %c0_31] : memref<8x16xf32, #tpu.memory_space<vmem>>, vector<8x16xf32>
      %c0_32 = arith.constant 0 : index
      %c0_33 = arith.constant 0 : index
      %45 = vector.load %arg8[%c0_32, %c0_33] : memref<8x1xf32, #tpu.memory_space<vmem>>, vector<8x1xf32>
      %46 = vector.broadcast %45 : vector<8x1xf32> to vector<8x16xf32>
      %47 = arith.addf %44, %46 : vector<8x16xf32>
      %c0_34 = arith.constant 0 : index
      %c0_35 = arith.constant 0 : index
      %c0_36 = arith.constant 0 : index
      %48 = vector.load %arg9[%c0_34, %c0_35, %c0_36] : memref<1x8x16xf32, #tpu.memory_space<vmem>>, vector<1x8x16xf32>
      %49 = vector.shape_cast %48 : vector<1x8x16xf32> to vector<8x16xf32>
      %50 = vector.shape_cast %47 : vector<8x16xf32> to vector<1x8x16xf32>
      tpu.vector_store %arg9[%c0_34, %c0_35, %c0_36], %50 {strides = array<i32>} : memref<1x8x16xf32, #tpu.memory_space<vmem>>, vector<1x8x16xf32>,
    } else {
    }
    return
  }
  func.func @transform_0(%arg0: i32, %arg1: i32, %arg2: i32, %arg3: i32) -> (i32, i32, i32) {
    %c0_i32 = arith.constant 0 : i32
    return %arg0, %arg2, %arg1 : i32, i32, i32
  }
  func.func @transform_1(%arg0: i32, %arg1: i32, %arg2: i32, %arg3: i32) -> (i32, i32, i32) {
    %c4_i32 = arith.constant 4 : i32
    %0 = arith.addi %c4_i32, %arg2 : i32
    %c0_i32 = arith.constant 0 : i32
    return %arg0, %0, %arg3 : i32, i32, i32
  }
  func.func @transform_2(%arg0: i32, %arg1: i32, %arg2: i32, %arg3: i32) -> (i32, i32, i32) {
    %c8_i32 = arith.constant 8 : i32
    %0 = arith.addi %c8_i32, %arg2 : i32
    %c0_i32 = arith.constant 0 : i32
    return %arg0, %0, %arg3 : i32, i32, i32
  }
  func.func @transform_3(%arg0: i32, %arg1: i32, %arg2: i32, %arg3: i32) -> (i32, i32, i32) {
    %c0_i32 = arith.constant 0 : i32
    %c0_i32_0 = arith.constant 0 : i32
    %c0_i32_1 = arith.constant 0 : i32
    %c0_i32_2 = arith.constant 0 : i32
    return %c0_i32, %c0_i32_0, %c0_i32_1 : i32, i32, i32
  }
  func.func @transform_4(%arg0: i32, %arg1: i32, %arg2: i32, %arg3: i32) -> (i32, i32) {
    %c0_i32 = arith.constant 0 : i32
    %c0_i32_0 = arith.constant 0 : i32
    %c0_i32_1 = arith.constant 0 : i32
    return %c0_i32, %c0_i32_0 : i32, i32
  }
  func.func @transform_5(%arg0: i32, %arg1: i32, %arg2: i32, %arg3: i32) -> (i32, i32, i32) {
    %c0_i32 = arith.constant 0 : i32
    %c0_i32_0 = arith.constant 0 : i32
    return %arg0, %c0_i32, %arg1 : i32, i32, i32
  }
}

</mosaic_0001>

<bundles_post_ra>
// kernel: squeeze.3
= control target key start
LH: loop header
LB: loop body
LE: loop exit
PB: predicated region body
PF: predicated region fallthrough
CT: control target
= control target key end

     0   :  { %vm3_vm0 = vcmask 261120   ;;  %s94_s8 = smov 32   ;;  %s95_s9 = smov 64   ;;  %s141_s0 = inlined_call_operand.vmem [shape: f32[8,128], index: 0, kind: input, shape index: {}]   ;;  %s142_s1 = inlined_call_operand.vmem [shape: f32[8,4,32], index: 1, kind: output, shape index: {}]  }
   0x1   :  { %v6_v0 = vld [vmem:[%s141_s0] sm:$0xff]   ;;  %s93_s0 = smov 96  }
   0x2   :  { %7 = vrot.lane.b32.xlu0 %v6_v0, %s93_s0  ;;  %23 = vrot.lane.b32.xlu1 %v6_v0, %s94_s8  ;;  %5 = vst.msk [vmem:[#allocation0] ss:$8 sm:$0xf0] %vm3_vm0, %v6_v0   ;;  %4 = vst.msk [vmem:[#allocation0] ss:$8 sm:$0xf] %vm3_vm0, %v6_v0  }
   0x6   :  { %15 = vrot.lane.b32.xlu0 %v6_v0, %s95_s9 }
  0x74   :  { %v8_v1 = vpop.permute.xlu0 %7   ;;  %v24_v2 = vpop.permute.xlu1 %23  }
  0x75   :  { %11 = vst.msk [vmem:[#allocation0 + $0x1] ss:$8 sm:$0xf] %vm3_vm0, %v8_v1   ;;  %13 = vst.msk [vmem:[#allocation0 + $0x1] ss:$8 sm:$0xf0] %vm3_vm0, %v8_v1  }
  0x76   :  { %27 = vst.msk [vmem:[#allocation0 + $0x3] ss:$8 sm:$0xf] %vm3_vm0, %v24_v2   ;;  %29 = vst.msk [vmem:[#allocation0 + $0x3] ss:$8 sm:$0xf0] %vm3_vm0, %v24_v2  }
  0x78   :  { %v16_v3 = vpop.permute.xlu0 %15  }
  0x79   :  { %19 = vst.msk [vmem:[#allocation0 + $0x2] ss:$8 sm:$0xf] %vm3_vm0, %v16_v3   ;;  %21 = vst.msk [vmem:[#allocation0 + $0x2] ss:$8 sm:$0xf0] %vm3_vm0, %v16_v3  }
  0x80   :  { %v33_v4 = vld [vmem:[#allocation0] sm:$0xf]  ;;  %v37_v5 = vld [vmem:[#allocation0 + $0x8] sm:$0xf]  ;;  %v42_v6 = vld [vmem:[#allocation0 + $0x10] sm:$0xf] }
  0x81   :  { %35 = vst [vmem:[%s142_s1] sm:$0xf] %v33_v4  ;;  %83 = vst [vmem:[%s142_s1 + $0x4] sm:$0xf] %v37_v5  ;;  %v48_v7 = vld [vmem:[#allocation0 + $0x18] sm:$0xf] }
  0x82   :  { %84 = vst [vmem:[%s142_s1 + $0x8] sm:$0xf] %v42_v6  ;;  %v54_v8 = vld [vmem:[#allocation0 + $0x20] sm:$0xf]  ;;  %v60_v9 = vld [vmem:[#allocation0 + $0x28] sm:$0xf] }
  0x83   :  { %85 = vst [vmem:[%s142_s1 + $0xc] sm:$0xf] %v48_v7  ;;  %86 = vst [vmem:[%s142_s1 + $0x10] sm:$0xf] %v54_v8  ;;  %v66_v10 = vld [vmem:[#allocation0 + $0x30] sm:$0xf] }
  0x84   :  { %87 = vst [vmem:[%s142_s1 + $0x14] sm:$0xf] %v60_v9  ;;  %v72_v11 = vld [vmem:[#allocation0 + $0x38] sm:$0xf]  ;;  %88 = vst [vmem:[%s142_s1 + $0x18] sm:$0xf] %v66_v10 }
  0x85   :  { %89 = vst [vmem:[%s142_s1 + $0x1c] sm:$0xf] %v72_v11 }

// kernel: attention_pallas.3
= control target key start
LH: loop header
LB: loop body
LE: loop exit
PB: predicated region body
PF: predicated region fallthrough
CT: control target
= control target key end

     0   :  { %10 = vsyncpa [#allocation8], 0  ;;  %s1482_s0 = inlined_call_operand.vmem [shape: f32[2,384,16], index: 0, kind: input, shape index: {}, may-alias: {0,1,2}]   ;;  %s1483_s1 = inlined_call_operand.vmem [shape: f32[2,384,16], index: 1, kind: input, shape index: {}, may-alias: {0,1,2}]   ;;  %s1484_s2 = inlined_call_operand.vmem [shape: f32[2,384,16], index: 2, kind: input, shape index: {}, may-alias: {0,1,2}]   ;;  %s1485_s3 = inlined_call_operand.vmem [shape: f32[4,8,32], index: 3, kind: input, shape index: {}]   ;;  %s1486_s4 = inlined_call_operand.vmem [shape: f32[8,1], index: 4, kind: input, shape index: {}]   ;;  %s1487_s5 = inlined_call_operand.hbm [shape: f32[2,8,16], index: 5, kind: output, shape index: {}]  }
   0x1   :  { %12 = vsyncpa [#allocation8 + $0x1], 0  ;;  %s1289_s18 = smov 0   ;;  %s1291_s19 = smov 0  }
   0x2   :  { %s1293_s20 = smov 0   ;;  %s1295_s21 = smov 0  }
   0x3   :  { %s1297_s22 = smov 0   ;;  %s1299_s23 = smov 0  }
   0x4   :  { %s1301_s24 = smov 0   ;;  %s1303_s25 = smov 0  }
   0x5 LB: > { %1491 = sst [smem:[#allocation10_spill]] %s1241_s23  ;;  %s957_s26 = sadd.s32 4294967295, %s1249_s25   ;;  %s1249_s25 = sphi %s1303_s25, %s18_s25   ;;  %s1245_s24 = sphi %s1301_s24, %s1500_s24   ;;  %s1241_s23 = sphi %s1299_s23, %s1499_s23   ;;  %s1237_s22 = sphi %s1297_s22, %s1498_s22   ;;  %s1233_s21 = sphi %s1295_s21, %s1497_s21   ;;  %s1229_s20 = sphi %s1293_s20, %s1503_s20   ;;  %s1225_s19 = sphi %s1291_s19, %s1502_s19   ;;  %s1221_s18 = sphi %s1289_s18, %s1501_s18  }
   0x6   : > { %1492 = sst [smem:[#allocation11_spill]] %s1245_s24  ;;  %s958_s27 = sadd.s32 4294967294, %s1249_s25  }
   0x7   : > { %s36_s28 = sadd.s32 1, %s1241_s23  ;;  %s44_s29 = sadd.s32 1, %s1245_s24 }
   0x8   : > { %p38_p0 = scmp.ge.s32.totalorder %s36_s28, 4  ;;  %p199_p1 = scmp.ne.s32.totalorder %s1229_s20, %s1225_s19 }
   0x9   : > { %p200_p2 = scmp.eq.s32.totalorder %s957_s26, 7  ;;  %p205_p4 = scmp.ne.s32.totalorder %s1225_s19, %s1221_s18 }
   0xa   : > { %s1505_s28 = smov (%p38_p0, %s36_s28), 0  ;;  %s1507_s29 = smov (!%p38_p0, %s44_s29), %s1245_s24 }
   0xb   : > { %1493 = sst [smem:[#allocation12_spill]] %s1505_s28  ;;  %p1338_p3 = por %p200_p2, %p199_p1 }
   0xc   : > { %p46_p5 = scmp.ge.s32.totalorder %s1507_s29, 2  ;;  %p206_p6 = scmp.eq.s32.totalorder %s958_s27, 7 }
   0xd   : > { %p961_p7 = scmp.ge.s32.totalorder %s1249_s25, 1  ;;  %p282_p8 = scmp.lt.s32.totalorder %s1249_s25, 9 }
   0xe   : > { %s1509_s29 = smov (%p46_p5, %s1507_s29), 0  ;;  %p1348_p9 = por %p206_p6, %p205_p4 }
   0xf   : > { %1495 = sst [smem:[#allocation13_spill]] %s1509_s29  ;;  %p283_p10 = pnand %p961_p7, %p282_p8 }
  0x10   : > { %s184_s7 = ssub.s32 %s1245_s24, %s1509_s29  ;;  %s189_s8 = sadd.s32 1, %s1229_s20  ;;  %vm426_vm0 = vcmask (!%p283_p10), 261120   ;;  %vm429_vm1 = vcmask (!%p283_p10), 7168   ;;  %v1251_v0 = vmov (!%p283_p10), -inf   ;;  %v1252_v1 = vmov (!%p283_p10), 0.0  }
  0x11   : > { %p187_p11 = scmp.eq.s32.totalorder %s184_s7, 0  ;;  %286 = sbr.rel (%p283_p10) target bundleno = 1232 (0x4d0), region = 40  ;;  %430 = vst.msk [vmem:[#allocation3] sm:$0xff] (!%p283_p10), %vm429_vm1, %v1251_v0  ;;  %431 = vst.msk [vmem:[#allocation3 + $0x8] sm:$0xff] (!%p283_p10), %vm429_vm1, %v1251_v0 }
  0x12   : > { %s963_s10 = sshll.u32 (!%p283_p10), %s1233_s21, 2  ;;  %p344_p12 = scmp.lt.s32.totalorder (!%p283_p10), %s1237_s22, 1  ;;  %432 = vst.msk [vmem:[#allocation4] sm:$0xff] (!%p283_p10), %vm429_vm1, %v1252_v1  ;;  %433 = vst.msk [vmem:[#allocation4 + $0x8] sm:$0xff] (!%p283_p10), %vm429_vm1, %v1252_v1 }
  0x13   : > { %s1356_s9 = scalar_select %p187_p11, %s1229_s20, %s189_s8  }
  0x14   : > { %p346_p13 = scmp.lt.s32.totalorder (!%p283_p10), %s963_s10, 47  ;;  %s988_s11 = sadd.s32 (!%p283_p10), 16, %s963_s10  ;;  %434 = vst.msk [vmem:[#allocation5] sm:$0xff] (!%p283_p10), %vm426_vm0, %v1252_v1  ;;  %435 = vst.msk [vmem:[#allocation5 + $0x8] sm:$0xff] (!%p283_p10), %vm426_vm0, %v1252_v1 }
  0x15   : > { %p360_p0 = scmp.lt.s32.totalorder (!%p283_p10), %s988_s11, 47  ;;  %s990_s15 = sadd.s32 (!%p283_p10), 32, %s963_s10 }
  0x16   : > { %p375_p1 = scmp.lt.s32.totalorder (!%p283_p10), %s990_s15, 47  ;;  %p436_p2 = scmp.eq.s32.totalorder (!%p283_p10), %s1233_s21, 0 }
  0x18   : > { %s345_s12 = scalar_select %p344_p12, %s1237_s22, 1 }
  0x19   : > { %s347_s13 = scalar_select %p346_p13, %s963_s10, 47 }
  0x1a   : > { %s1061_s14 = smul.u32 48, %s345_s12  ;;  %s1511_s11 = smov (!%p360_p0, %s988_s11), 47  ;;  %vm441_vm2 = vcmask (%p436_p2), 130048   ;;  %v1253_v8 = vmov (%p436_p2), 0.0  }
  0x1b   : > { %s1513_s15 = smov (!%p375_p1, %s990_s15), 47  ;;  %442 = vst.msk [vmem:[#allocation6] sm:$0xff] (%p436_p2), %vm441_vm2, %v1253_v8 }
  0x1c   : > { %s352_s16 = sadd.s32 %s1061_s14, %s347_s13  ;;  %s366_s8 = sadd.s32 %s1061_s14, %s1511_s11 }
  0x1d   : > { %s964_s17 = sshll.u32 %s352_s16, 3  ;;  %s966_s29 = sshll.u32 %s366_s8, 3 }
  0x1e   : > { %s354_s7 = scalar_lea.vmem %s1482_s0, %s964_s17  ;;  %s381_s12 = sadd.s32 %s1061_s14, %s1513_s15 }
  0x1f   : > { %v390_v2 = vld [vmem:[%s354_s7] sm:$0xff]  ;;  %v391_v3 = vld [vmem:[%s354_s7 + $0x8] sm:$0xff]  ;;  %s368_s13 = scalar_lea.vmem %s1483_s1, %s966_s29  ;;  %s968_s24 = sshll.u32 %s381_s12, 3  ;;  %v392_v4 = vld [vmem:[%s354_s7 + $0x10] sm:$0xff] }
  0x20   : > { %394 = vxpose.xlu0.b32.start [1/4] (short) (narrow) %v390_v2, 16  ;;  %s1380_s26 = scalar_lea.vmem %s1484_s2, %s968_s24  ;;  %s340_s17 = sand.u32 1, %s1225_s19   ;;  %v393_v5 = vld [vmem:[%s354_s7 + $0x18] sm:$0xff] }
  0x21   : > { %s1385_s27 = sshll.u32 %s340_s17, 3 }
  0x22   : > { %s342_s23 = scalar_lea.vmem [#allocation7], %s1385_s27 }
  0x24   : > { %395 = vxpose.xlu0.b32.cont [2/4] (short) (narrow) %v391_v3, 16 }
  0x28   : > { %396 = vxpose.xlu0.b32.cont [3/4] (short) (narrow) %v392_v4, 16 }
  0x2c   : > { %397 = vxpose.xlu0.b32.end [4/4] (short) (narrow) %v393_v5, 16 }
  0x9f   : > { %440 = sbr.rel (!%p436_p2) target bundleno = 166 (0xa6), region = 48 }
  0xa0   : > { %v410_v6 = vpop.trf.xlu0 }
  0xa1   : > { %427 = vst.msk [vmem:[#allocation2] sm:$0xff] %vm426_vm0, %v410_v6 }
  0xa4   : > { %v411_v7 = vpop.trf.xlu0 }
  0xa5   : > { %428 = vst.msk [vmem:[#allocation2 + $0x8] sm:$0xff] %vm426_vm0, %v411_v7 }
  0xa6 PF: > { %v443_v9 = vld [vmem:[%s368_s13] sm:$0xff]  ;;  %v444_v10 = vld [vmem:[%s368_s13 + $0x8] sm:$0xff]  ;;  %v445_v11 = vld [vmem:[%s368_s13 + $0x10] sm:$0xff]  ;;  %vm537_vm3 = vcmask 130048   ;;  %v1254_v21 = vmov 0   ;;  %v1255_v58 = vmov 0.0|0.0  }
  0xa7   : > { %v1037_v12 = vpack.c.bf16 %v444_v10, %v443_v9  ;;  %v446_v13 = vld [vmem:[%s368_s13 + $0x18] sm:$0xff]  ;;  %1140 = vset.pattern.permute.xlu1 %v1254_v21  ;;  %1141 = vset.pattern.permute.xlu0 %v1254_v21  ;;  %v535_v22 = vld [vmem:[#allocation3] sm:$0xff]  ;;  %v447_v25 = vld [vmem:[%s1380_s26] sm:$0xff]  ;;  %vm1256_vm5 = vmmov 0   ;;  %s978_s24 = sshll.u32 %s1233_s21, 3  ;;  %p798_p4 = scmp.eq.s32.totalorder %s1233_s21, 3 }
  0xa8   : > { %v451_v14 = vld [vmem:[#allocation2] sm:$0xff]  ;;  %v1041_v15 = vpack.c.bf16 %v446_v13, %v445_v11  ;;  %v448_v26 = vld [vmem:[%s1380_s26 + $0x8] sm:$0xff]  ;;  %v536_v27 = vld [vmem:[#allocation3 + $0x8] sm:$0xff]  ;;  %s714_s11 = scalar_lea.vmem %s1485_s3, %s978_s24 }
  0xa9   : > { %1016 = vmatprep.mubr.msk.f32.mxu0 %vm426_vm0, %v451_v14  ;;  %1038 = vmatprep.subr.bf16.mxu0 %v1037_v12  ;;  %v1045_v28 = vpack.c.bf16 %v448_v26, %v447_v25  ;;  %vm1046_vm4 = vmpackc.low %vm537_vm3, %vm537_vm3  ;;  %v449_v33 = vld [vmem:[%s1380_s26 + $0x10] sm:$0xff]  ;;  %v450_v34 = vld [vmem:[%s1380_s26 + $0x18] sm:$0xff] }
  0xaa   : > { %1040 = vmatpush3.bf16.msra.mxu0 %v1037_v12  ;;  %v1051_v35 = vpack.c.bf16 %v450_v34, %v449_v33  ;;  %v564_v46 = vld [vmem:[#allocation4] sm:$0xff]  ;;  %v565_v49 = vld [vmem:[#allocation4 + $0x8] sm:$0xff]  ;;  %v580_v59 = vld [vmem:[#allocation5 + $0x8] sm:$0xff] }
  0xab   : > { %1042 = vmatprep.subr.bf16.mxu0 %v1041_v15  ;;  %1047 = vmatprep.subr.msk.bf16.mxu1 %vm1046_vm4, %v1045_v28  ;;  %v579_v61 = vld [vmem:[#allocation5] sm:$0xff]  ;;  %vm1059_vm6 = vmpackc.low %vm426_vm0, %vm426_vm0  ;;  %v715_v12 = vld [vmem:[%s714_s11] sm:$0xff] }
  0xac   : > { %v452_v16 = vld [vmem:[#allocation2 + $0x8] sm:$0xff]  ;;  %1050 = vmatpush3.bf16.xpose.msk.msra.mxu1 %vm1046_vm4, %v1045_v28  ;;  %v716_v13 = vld [vmem:[#allocation6] sm:$0xff] }
  0xad   : > { %1053 = vmatprep.subr.msk.bf16.mxu1 %vm1046_vm4, %v1051_v35 }
  0xae   : > { %1044 = vmatpush3.bf16.msra.mxu0 %v1041_v15 }
  0xaf   : > { %1057 = vmatprep.subr.bf16.mxu0 %v1255_v58 }
  0xb1   : > { %1017 = vmatmul.mubr.msk.f32.vlgmr.msra.gmra.mrb[0].mxu0 %vm426_vm0, %v452_v16 }
  0xb2   : > { %1034 = vmatprep.mubr.msk.f32.mxu0 %vm1256_vm5, %v1252_v1 }
  0xb4   : > { %1056 = vmatpush3.bf16.xpose.msk.msra.mxu1 %vm1046_vm4, %v1051_v35 }
 0x184   : > { %v1018_v17 = vpop.f32.mrb[0].mxu0 }
 0x185   : > { %v526_v18 = vpop.f32.mrb[1].mxu0  ;;  %v541_v20 = vsel %vm537_vm3, %v1018_v17, -inf }
 0x186   : > { %v538_v19 = vsel %vm537_vm3, %v526_v18, -inf }
 0x187   : > { %539 = vmax.xlane.f32.xlu0 %v538_v19 }
 0x18b   : > { %542 = vmax.xlane.f32.xlu0 %v541_v20 }
 0x214   : > { %v540_v23 = vpop.xlane.xlu0 %539 }
 0x215   : > { %v544_v24 = vmax.f32 %v535_v22, %v540_v23 }
 0x217   : > { %v546_v29 = vsub.f32 %v535_v22, %v544_v24  ;;  %690 = vst.msk [vmem:[#allocation3] sm:$0xff] %vm429_vm1, %v544_v24  ;;  %552 = vperm.xlu1 %1140, %v544_v24  }
 0x218   : > { %v543_v30 = vpop.xlane.xlu0 %542 }
 0x219   : > { %v545_v31 = vmax.f32 %v536_v27, %v543_v30 }
 0x21b   : > { %v547_v32 = vsub.f32 %v536_v27, %v545_v31  ;;  %691 = vst.msk [vmem:[#allocation3 + $0x8] sm:$0xff] %vm429_vm1, %v545_v31  ;;  %557 = vperm.xlu1 %1140, %v545_v31  }
 0x296   : > { %v553_v36 = vpop.permute.xlu1 %552 }
 0x297   : > { %v560_v37 = vsub.f32 %v526_v18, %v553_v36  ;;  %v1257_v18 = vmov (%p798_p4), 0  }
 0x299   : > { %1142 = vpow2.f32 %v560_v37 }
 0x29a   : > { %v558_v38 = vpop.permute.xlu1 %557 }
 0x29b   : > { %v561_v39 = vsub.f32 %v1018_v17, %v558_v38  ;;  %v804_v17 = vld [vmem:[%s1486_s4] sm:$0xff] (%p798_p4) }
 0x29d   : > { %1144 = vpow2.f32 %v561_v39 }
 0x29e   : > { %1146 = vpow2.f32 %v547_v32 }
 0x29f   : > { %1148 = vpow2.f32 %v546_v29 }
 0x2a3   : > { %v1143_v40 = vpop.eup %1142 }
 0x2a4   : > { %1027 = vmatprep.mubr.msk.f32.mxu1 %vm537_vm3, %v1143_v40  ;;  %v568_v41 = vsel %vm537_vm3, %v1143_v40, 0.0 }
 0x2a5   : > { %569 = vadd.xlane.f32.xlu0 %v568_v41 }
 0x2a7   : > { %v1145_v42 = vpop.eup %1144 }
 0x2a8   : > { %1028 = vmatmul.mubr.msk.f32.vlgmr.msra.gmra.mrb[0].mxu1 %vm537_vm3, %v1145_v42  ;;  %v571_v43 = vsel %vm537_vm3, %v1145_v42, 0.0  ;;  %v1147_v44 = vpop.eup %1146 }
 0x2a9   : > { %572 = vadd.xlane.f32.xlu1 %v571_v43  ;;  %v1149_v45 = vpop.eup %1148  ;;  %v567_v51 = vmul.f32 %v1147_v44, %v565_v49 }
 0x2aa   : > { %v566_v47 = vmul.f32 %v1149_v45, %v564_v46 }
 0x2ba   : > { %588 = vperm.xlu1 %1140, %v1147_v44  }
 0x2bb   : > { %583 = vperm.xlu0 %1141, %v1149_v45  }
 0x332   : > { %v570_v48 = vpop.xlane.xlu0 %569 }
 0x333   : > { %v574_v50 = vadd.f32 %v570_v48, %v566_v47 }
 0x335   : > { %577 = vst.msk [vmem:[#allocation4] sm:$0xff] %vm429_vm1, %v574_v50 }
 0x336   : > { %v573_v52 = vpop.xlane.xlu1 %572 }
 0x337   : > { %v575_v53 = vadd.f32 %v573_v52, %v567_v51 }
 0x339   : > { %578 = vst.msk [vmem:[#allocation4 + $0x8] sm:$0xff] %vm429_vm1, %v575_v53 }
 0x33a   : > { %v589_v60 = vpop.permute.xlu1 %588  ;;  %v584_v62 = vpop.permute.xlu0 %583 }
 0x33b   : > { %v592_v63 = vmul.f32 %v589_v60, %v580_v59  ;;  %v591_v0 = vmul.f32 %v584_v62, %v579_v61 }
 0x33c   : > { %v697_v54 = vld [vmem:[#allocation4] sm:$0xff] }
 0x33d   : > { %1150 = vrcp.f32 %v697_v54 }
 0x340   : > { %v698_v55 = vld [vmem:[#allocation4 + $0x8] sm:$0xff] }
 0x341   : > { %1152 = vrcp.f32 %v698_v55 }
 0x347   : > { %v1151_v56 = vpop.eup %1150 }
 0x348   : > { %703 = vperm.xlu0 %1141, %v1151_v56  }
 0x34b   : > { %v1153_v57 = vpop.eup %1152 }
 0x34c   : > { %708 = vperm.xlu0 %1141, %v1153_v57  }
 0x350   : > { %1154 = vset.pattern.permute.xlu0 (%p798_p4), %v1257_v18 }
 0x351   : > { %807 = vperm.xlu0 (%p798_p4), %1154, %v804_v17  }
 0x37b   : > { %v1029_v2 = vpop.f32.mrb[0].mxu1 }
 0x37c   : > { %v687_v3 = vadd.f32 %v1029_v2, %v592_v63  ;;  %v677_v4 = vpop.f32.mrb[1].mxu1 }
 0x37d   : > { %v686_v5 = vadd.f32 %v677_v4, %v591_v0 }
 0x37e   : > { %689 = vst.msk [vmem:[#allocation5 + $0x8] sm:$0xff] %vm426_vm0, %v687_v3 }
 0x37f   : > { %688 = vst.msk [vmem:[#allocation5] sm:$0xff] %vm426_vm0, %v686_v5 }
 0x385   : > { %v696_v8 = vld [vmem:[#allocation5 + $0x8] sm:$0xff] }
 0x386   : > { %v695_v7 = vld [vmem:[#allocation5] sm:$0xff] }
 0x3c7   : > { %v704_v6 = vpop.permute.xlu0 %703 }
 0x3c8   : > { %v711_v9 = vmul.f32 %v704_v6, %v695_v7 }
 0x3cb   : > { %v709_v1 = vpop.permute.xlu0 %708 }
 0x3cc   : > { %v712_v10 = vmul.f32 %v709_v1, %v696_v8 }
 0x3ce   : > { %v1058_v11 = vpack.c.bf16 %v712_v10, %v711_v9 }
 0x3d0   : > { %1060 = vmatpush3.bf16.xpose.msk.msra.mxu0 %vm1059_vm6, %v1058_v11  ;;  %v808_v20 = vpop.permute.xlu0 (%p798_p4), %807 }
 0x3d7   : > { %1035 = vmatmul.mubr.msk.f32.vlgmr.msra.gmra.mrb[2].mxu0 %vm426_vm0, %v715_v12 }
 0x4a7   : > { %802 = sbr.rel (!%p798_p4) target bundleno = 1208 (0x4b8), region = 56 }
 0x4aa   : > { %v792_v14 = vpop.f32.mrb[2].mxu0 }
 0x4ab   : > { %v796_v15 = vadd.f32 %v792_v14, %v716_v13  ;;  %v1036_v16 = vpop.f32.mrb[3].mxu0 }
 0x4ad   : > { %797 = vst.msk [vmem:[#allocation6] sm:$0xff] %vm537_vm3, %v796_v15 }
 0x4b4   : > { %v803_v19 = vld [vmem:[#allocation6] sm:$0xff] }
 0x4b5   : > { %v810_v21 = vadd.f32 %v808_v20, %v803_v19 }
 0x4b7   : > { %811 = vst.msk [vmem:[%s342_s23] sm:$0xff] %vm537_vm3, %v810_v21 }
 0x4b8 PF: > { %s984_s21 = sshll.u32 %s1237_s22, 7  ;;  %s827_s10 = sshll.u32 %s342_s23, 4  ;;  %s828_s10 = int_to_ptr.vmem [resolvable:$true] %s827_s10 }
 0x4b9   : > { %s1431_s12 = scalar_lea.hbm %s1487_s5, %s984_s21  ;;  %s813_s13 = scalar_lea.sflag [#allocation8], %s340_s17 }
 0x4ba   : > { %s1155_s16 = scalar_lea.vmem %s828_s10, 128  ;;  %s1258_s26 = smov [#allocation7]  }
 0x4bb   : > { %p1156_p5 = scmp.ne.s32.totalorder %s828_s10, %s1155_s16  ;;  %s1159_s24 = sshll.u32 %s1258_s26, 4  ;;  %s1160_s24 = int_to_ptr.vmem [resolvable:$false] %s1159_s24 }
 0x4bc   : > { %s1161_s28 = scalar_lea.vmem %s1160_s24, 256  ;;  %p1162_p8 = scmp.lt.s32.totalorder %s828_s10, %s1160_s24 }
 0x4bd   : > { %p1157_p6 = pnand %p1156_p5, %p1338_p3  ;;  %p1163_p10 = scmp.lt.s32.totalorder %s1161_s28, %s1155_s16 }
 0x4bf   : > { %p1158_p7 = pneg %p1157_p6  ;;  %p1164_p11 = por %p1163_p10, %p1162_p8 }
 0x4c1   : > { %p1165_p12 = pnand %p1164_p11, %p1158_p7 }
 0x4c3   : > { %1168 = shalt.err (!%p1165_p12)
}
 0x4c4   : > { %s1169_s22 = scalar_lea.hbm %s1431_s12, 128  ;;  %s1173_s23 = scalar_lea.hbm %s1487_s5, 256 }
 0x4c5   : > { %p1170_p13 = scmp.ne.s32.totalorder %s1431_s12, %s1169_s22  ;;  %p1174_p2 = scmp.lt.u32.totalorder %s1431_s12, %s1487_s5 }
 0x4c6   : > { %p1175_p4 = scmp.lt.u32.totalorder %s1173_s23, %s1169_s22  ;;  %p1177_p6 = scmp.lt.u32.totalorder %s1169_s22, %s1431_s12 }
 0x4c7   : > { %p1171_p0 = pnand %p1170_p13, %p1338_p3 }
 0x4c8   : > { %p1176_p5 = por %p1175_p4, %p1174_p2 }
 0x4c9   : > { %p1172_p1 = pneg %p1171_p0 }
 0x4ca   : > { %p1178_p7 = por %p1177_p6, %p1176_p5 }
 0x4cc   : > { %p1179_p8 = pnand %p1178_p7, %p1172_p1 }
 0x4ce   : > { %1182 = shalt.err (!%p1179_p8)
}
 0x4cf   : > { %1062 = dma.vmem_to_hbm [thread:$0]  (%p1338_p3), %s828_s10, 128, %s1431_s12, %s813_s13  }
 0x4d0 PF: > { %p1068_p10 = scmp.ge.s32.totalorder %s1249_s25, 2  ;;  %s839_s14 = sand.u32 1, %s1221_s18  }
 0x4d1   : > { %s840_s15 = scalar_lea.sflag [#allocation8], %s839_s14 }
 0x4d2   : > { %p1065_p11 = pnand %p1068_p10, %p1348_p9 }
 0x4d4   : > { %1216 = dma.done.wait (!%p1065_p11), %s840_s15, 128  }
 0x4d5   : > { %1218 = vsyncadd (!%p1065_p11), %s840_s15, 4294967168  ;;  %s18_s25 = sadd.s32 1, %s1249_s25   ;;  %s1497_s21 = sld [smem:[#allocation10_spill]] }
 0x4d6   : > { %p15_p12 = scmp.ge.s32.totalorder %s18_s25, 10   ;;  %s1498_s22 = sld [smem:[#allocation11_spill]] }
 0x4d7   : > { %s1499_s23 = sld [smem:[#allocation12_spill]]  ;;  %s1500_s24 = sld [smem:[#allocation13_spill]] }
 0x4d8   : > { %s1501_s18 = smov %s1225_s19  ;;  %s1502_s19 = smov %s1229_s20 }
 0x4d9   : > { %s1503_s20 = smov %s1356_s9  ;;  %17 = sbr.rel (!%p15_p12) target bundleno = 5 (0x5), region = 98 }
 0x4e0   :  { %845 = vsyncpa [#allocation8], 1 }
 0x4e1   :  { %847 = vsyncpa [#allocation8 + $0x1], 1 }

// kernel: attention_pallas.2
= control target key start
LH: loop header
LB: loop body
LE: loop exit
PB: predicated region body
PF: predicated region fallthrough
CT: control target
= control target key end

     0   :  { %s1046_s9 = smov 0   ;;  %s1048_s10 = smov 0   ;;  %s1373_s0 = inlined_call_operand.vmem [shape: f32[2,8,16], index: 0, kind: input, shape index: {}]   ;;  %s1374_s1 = inlined_call_operand.vmem [shape: f32[384,8], index: 1, kind: input, shape index: {}]   ;;  %s1375_s2 = inlined_call_operand.vmem [shape: f32[2,384,16], index: 2, kind: output, shape index: {}]  }
   0x1   :  { %s1050_s11 = smov 0  }
   0x2 LB: > { %s24_s12 = sadd.s32 1, %s1025_s10  ;;  %p804_p0 = scmp.ge.s32.totalorder %s1029_s11, 1  ;;  %s1029_s11 = sphi %s1050_s11, %s12_s11   ;;  %s1025_s10 = sphi %s1048_s10, %s1377_s10   ;;  %s1021_s9 = sphi %s1046_s9, %s1376_s9  }
   0x3   : > { %p26_p1 = scmp.ge.s32.totalorder %s24_s12, 2  ;;  %p130_p2 = scmp.lt.s32.totalorder %s1029_s11, 3 }
   0x5   : > { %s1379_s12 = smov (%p26_p1, %s24_s12), 0  ;;  %p131_p3 = pnand %p804_p0, %p130_p2 }
   0x6   : > { %p157_p4 = scmp.lt.s32.totalorder (!%p131_p3), %s1021_s9, 1  ;;  %v172_v0 = vld [vmem:[%s1374_s1] sm:$0xff] (!%p131_p3)  ;;  %vm221_vm0 = vcmask (!%p131_p3), 64512   ;;  %v173_v3 = vld [vmem:[%s1374_s1 + $0x8] sm:$0xff] (!%p131_p3)  ;;  %v174_v5 = vld [vmem:[%s1374_s1 + $0x10] sm:$0xff] (!%p131_p3)  ;;  %vm671_vm1 = vcmask (!%p131_p3), 130048  }
   0x7   : > { %134 = sbr.rel (%p131_p3) target bundleno = 278 (0x116), region = 28  ;;  %v196_v1 = vld [vmem:[%s1374_s1 + $0xc0] sm:$0xff] (!%p131_p3)  ;;  %908 = vmatprep.mubr.msk.f32.mxu0 (!%p131_p3), %vm221_vm0, %v172_v0  ;;  %v197_v4 = vld [vmem:[%s1374_s1 + $0xc8] sm:$0xff] (!%p131_p3)  ;;  %v198_v6 = vld [vmem:[%s1374_s1 + $0xd0] sm:$0xff] (!%p131_p3) }
   0x8   : > { %944 = vmatprep.mubr.msk.f32.mxu1 (!%p131_p3), %vm221_vm0, %v196_v1  ;;  %v175_v7 = vld [vmem:[%s1374_s1 + $0x18] sm:$0xff] (!%p131_p3)  ;;  %v176_v9 = vld [vmem:[%s1374_s1 + $0x20] sm:$0xff] (!%p131_p3)  ;;  %v177_v11 = vld [vmem:[%s1374_s1 + $0x28] sm:$0xff] (!%p131_p3) }
   0x9   : > { %v199_v8 = vld [vmem:[%s1374_s1 + $0xd8] sm:$0xff] (!%p131_p3)  ;;  %v200_v10 = vld [vmem:[%s1374_s1 + $0xe0] sm:$0xff] (!%p131_p3)  ;;  %v201_v12 = vld [vmem:[%s1374_s1 + $0xe8] sm:$0xff] (!%p131_p3) }
   0xa   : > { %v178_v13 = vld [vmem:[%s1374_s1 + $0x30] sm:$0xff] (!%p131_p3)  ;;  %v179_v15 = vld [vmem:[%s1374_s1 + $0x38] sm:$0xff] (!%p131_p3)  ;;  %v180_v17 = vld [vmem:[%s1374_s1 + $0x40] sm:$0xff] (!%p131_p3) }
   0xb   : > { %v202_v14 = vld [vmem:[%s1374_s1 + $0xf0] sm:$0xff] (!%p131_p3)  ;;  %v203_v16 = vld [vmem:[%s1374_s1 + $0xf8] sm:$0xff] (!%p131_p3)  ;;  %v204_v18 = vld [vmem:[%s1374_s1 + $0x100] sm:$0xff] (!%p131_p3) }
   0xc   : > { %v181_v19 = vld [vmem:[%s1374_s1 + $0x48] sm:$0xff] (!%p131_p3)  ;;  %v182_v21 = vld [vmem:[%s1374_s1 + $0x50] sm:$0xff] (!%p131_p3)  ;;  %v183_v23 = vld [vmem:[%s1374_s1 + $0x58] sm:$0xff] (!%p131_p3) }
   0xd   : > { %v205_v20 = vld [vmem:[%s1374_s1 + $0x108] sm:$0xff] (!%p131_p3)  ;;  %v206_v22 = vld [vmem:[%s1374_s1 + $0x110] sm:$0xff] (!%p131_p3)  ;;  %v207_v24 = vld [vmem:[%s1374_s1 + $0x118] sm:$0xff] (!%p131_p3) }
   0xe   : > { %s1381_s9 = smov (!%p157_p4, %s1021_s9), 1  ;;  %v184_v25 = vld [vmem:[%s1374_s1 + $0x60] sm:$0xff]  ;;  %v185_v27 = vld [vmem:[%s1374_s1 + $0x68] sm:$0xff]  ;;  %v186_v29 = vld [vmem:[%s1374_s1 + $0x70] sm:$0xff] }
   0xf   : > { %s805_s17 = sshll.u32 %s1381_s9, 3  ;;  %v208_v26 = vld [vmem:[%s1374_s1 + $0x120] sm:$0xff]  ;;  %v209_v28 = vld [vmem:[%s1374_s1 + $0x128] sm:$0xff]  ;;  %v210_v30 = vld [vmem:[%s1374_s1 + $0x130] sm:$0xff] }
  0x10   : > { %s163_s20 = scalar_lea.vmem %s1373_s0, %s805_s17  ;;  %v187_v31 = vld [vmem:[%s1374_s1 + $0x78] sm:$0xff]  ;;  %v188_v33 = vld [vmem:[%s1374_s1 + $0x80] sm:$0xff]  ;;  %v189_v35 = vld [vmem:[%s1374_s1 + $0x88] sm:$0xff]  ;;  %s982_s17 = smul.u32 384, %s1381_s9 }
  0x11   : > { %v220_v2 = vld [vmem:[%s163_s20] sm:$0xff]  ;;  %v211_v32 = vld [vmem:[%s1374_s1 + $0x138] sm:$0xff]  ;;  %v213_v36 = vld [vmem:[%s1374_s1 + $0x148] sm:$0xff] }
  0x12   : > { %906 = vmatprep.subr.mxu0 %v220_v2  ;;  %980 = vmatprep.subr.mxu1 %v220_v2  ;;  %v212_v34 = vld [vmem:[%s1374_s1 + $0x140] sm:$0xff]  ;;  %v190_v37 = vld [vmem:[%s1374_s1 + $0x90] sm:$0xff]  ;;  %v191_v39 = vld [vmem:[%s1374_s1 + $0x98] sm:$0xff]  ;;  %s1266_s20 = scalar_lea.vmem %s1375_s2, %s982_s17 }
  0x13   : > { %907 = vmatpush3.msra.mxu0 %v220_v2  ;;  %981 = vmatpush3.msra.mxu1 %v220_v2  ;;  %v214_v38 = vld [vmem:[%s1374_s1 + $0x150] sm:$0xff]  ;;  %v215_v40 = vld [vmem:[%s1374_s1 + $0x158] sm:$0xff]  ;;  %v192_v41 = vld [vmem:[%s1374_s1 + $0xa0] sm:$0xff] }
  0x14   : > { %909 = vmatmul.mubr.msk.f32.vlgmr.msra.gmra.mrb[0].mxu0 %vm221_vm0, %v173_v3  ;;  %945 = vmatmul.mubr.msk.f32.vlgmr.msra.gmra.mrb[0].mxu1 %vm221_vm0, %v197_v4  ;;  %v216_v42 = vld [vmem:[%s1374_s1 + $0x160] sm:$0xff]  ;;  %v193_v43 = vld [vmem:[%s1374_s1 + $0xa8] sm:$0xff]  ;;  %v194_v45 = vld [vmem:[%s1374_s1 + $0xb0] sm:$0xff] }
  0x15   : > { %911 = vmatprep.mubr.msk.f32.mxu0 %vm221_vm0, %v174_v5  ;;  %947 = vmatprep.mubr.msk.f32.mxu1 %vm221_vm0, %v198_v6  ;;  %v217_v44 = vld [vmem:[%s1374_s1 + $0x168] sm:$0xff]  ;;  %v218_v46 = vld [vmem:[%s1374_s1 + $0x170] sm:$0xff]  ;;  %v195_v47 = vld [vmem:[%s1374_s1 + $0xb8] sm:$0xff] }
  0x16   : > { %v219_v48 = vld [vmem:[%s1374_s1 + $0x178] sm:$0xff] }
  0x18   : > { %912 = vmatmul.mubr.msk.f32.gmra.mrb[2].mxu0 %vm221_vm0, %v175_v7  ;;  %948 = vmatmul.mubr.msk.f32.gmra.mrb[2].mxu1 %vm221_vm0, %v199_v8 }
  0x19   : > { %914 = vmatprep.mubr.msk.f32.mxu0 %vm221_vm0, %v176_v9  ;;  %950 = vmatprep.mubr.msk.f32.mxu1 %vm221_vm0, %v200_v10 }
  0x1c   : > { %915 = vmatmul.mubr.msk.f32.gmra.mrb[4].mxu0 %vm221_vm0, %v177_v11  ;;  %951 = vmatmul.mubr.msk.f32.gmra.mrb[4].mxu1 %vm221_vm0, %v201_v12 }
  0x1d   : > { %917 = vmatprep.mubr.msk.f32.mxu0 %vm221_vm0, %v178_v13  ;;  %953 = vmatprep.mubr.msk.f32.mxu1 %vm221_vm0, %v202_v14 }
  0x20   : > { %918 = vmatmul.mubr.msk.f32.gmra.mrb[6].mxu0 %vm221_vm0, %v179_v15  ;;  %954 = vmatmul.mubr.msk.f32.gmra.mrb[6].mxu1 %vm221_vm0, %v203_v16 }
  0x21   : > { %920 = vmatprep.mubr.msk.f32.mxu0 %vm221_vm0, %v180_v17  ;;  %956 = vmatprep.mubr.msk.f32.mxu1 %vm221_vm0, %v204_v18 }
  0x24   : > { %921 = vmatmul.mubr.msk.f32.gmra.mrb[8].mxu0 %vm221_vm0, %v181_v19  ;;  %957 = vmatmul.mubr.msk.f32.gmra.mrb[8].mxu1 %vm221_vm0, %v205_v20 }
  0x25   : > { %923 = vmatprep.mubr.msk.f32.mxu0 %vm221_vm0, %v182_v21  ;;  %959 = vmatprep.mubr.msk.f32.mxu1 %vm221_vm0, %v206_v22 }
  0x28   : > { %924 = vmatmul.mubr.msk.f32.gmra.mrb[10].mxu0 %vm221_vm0, %v183_v23  ;;  %960 = vmatmul.mubr.msk.f32.gmra.mrb[10].mxu1 %vm221_vm0, %v207_v24 }
  0x29   : > { %926 = vmatprep.mubr.msk.f32.mxu0 %vm221_vm0, %v184_v25  ;;  %962 = vmatprep.mubr.msk.f32.mxu1 %vm221_vm0, %v208_v26 }
  0x2c   : > { %927 = vmatmul.mubr.msk.f32.gmra.mrb[12].mxu0 %vm221_vm0, %v185_v27  ;;  %963 = vmatmul.mubr.msk.f32.gmra.mrb[12].mxu1 %vm221_vm0, %v209_v28 }
  0x2d   : > { %929 = vmatprep.mubr.msk.f32.mxu0 %vm221_vm0, %v186_v29  ;;  %965 = vmatprep.mubr.msk.f32.mxu1 %vm221_vm0, %v210_v30 }
  0x30   : > { %930 = vmatmul.mubr.msk.f32.gmra.mrb[14].mxu0 %vm221_vm0, %v187_v31  ;;  %966 = vmatmul.mubr.msk.f32.gmra.mrb[14].mxu1 %vm221_vm0, %v211_v32 }
  0x31   : > { %932 = vmatprep.mubr.msk.f32.mxu0 %vm221_vm0, %v188_v33  ;;  %968 = vmatprep.mubr.msk.f32.mxu1 %vm221_vm0, %v212_v34 }
  0x34   : > { %933 = vmatmul.mubr.msk.f32.gmra.mrb[16].mxu0 %vm221_vm0, %v189_v35  ;;  %969 = vmatmul.mubr.msk.f32.gmra.mrb[16].mxu1 %vm221_vm0, %v213_v36 }
  0x35   : > { %935 = vmatprep.mubr.msk.f32.mxu0 %vm221_vm0, %v190_v37  ;;  %971 = vmatprep.mubr.msk.f32.mxu1 %vm221_vm0, %v214_v38 }
  0x38   : > { %936 = vmatmul.mubr.msk.f32.gmra.mrb[18].mxu0 %vm221_vm0, %v191_v39  ;;  %972 = vmatmul.mubr.msk.f32.gmra.mrb[18].mxu1 %vm221_vm0, %v215_v40 }
  0x39   : > { %938 = vmatprep.mubr.msk.f32.mxu0 %vm221_vm0, %v192_v41  ;;  %974 = vmatprep.mubr.msk.f32.mxu1 %vm221_vm0, %v216_v42 }
  0x3c   : > { %939 = vmatmul.mubr.msk.f32.gmra.mrb[20].mxu0 %vm221_vm0, %v193_v43  ;;  %975 = vmatmul.mubr.msk.f32.gmra.mrb[20].mxu1 %vm221_vm0, %v217_v44 }
  0x3d   : > { %941 = vmatprep.mubr.msk.f32.mxu0 %vm221_vm0, %v194_v45  ;;  %977 = vmatprep.mubr.msk.f32.mxu1 %vm221_vm0, %v218_v46 }
  0x40   : > { %942 = vmatmul.mubr.msk.f32.gmra.mrb[22].mxu0 %vm221_vm0, %v195_v47  ;;  %978 = vmatmul.mubr.msk.f32.gmra.mrb[22].mxu1 %vm221_vm0, %v219_v48 }
  0xe7   : > { %v910_v49 = vpop.f32.mrb[0].mxu0  ;;  %v946_v50 = vpop.f32.mrb[0].mxu1 }
  0xe8   : > { %673 = vst.msk [vmem:[%s1266_s20 + $0x8] sm:$0xff] %vm671_vm1, %v910_v49  ;;  %697 = vst.msk [vmem:[%s1266_s20 + $0xc8] sm:$0xff] %vm671_vm1, %v946_v50  ;;  %v432_v51 = vpop.f32.mrb[1].mxu0  ;;  %v552_v52 = vpop.f32.mrb[1].mxu1 }
  0xe9   : > { %672 = vst.msk [vmem:[%s1266_s20] sm:$0xff] %vm671_vm1, %v432_v51  ;;  %696 = vst.msk [vmem:[%s1266_s20 + $0xc0] sm:$0xff] %vm671_vm1, %v552_v52 }
  0xeb   : > { %v913_v53 = vpop.f32.mrb[2].mxu0  ;;  %v949_v54 = vpop.f32.mrb[2].mxu1 }
  0xec   : > { %675 = vst.msk [vmem:[%s1266_s20 + $0x18] sm:$0xff] %vm671_vm1, %v913_v53  ;;  %699 = vst.msk [vmem:[%s1266_s20 + $0xd8] sm:$0xff] %vm671_vm1, %v949_v54  ;;  %v442_v55 = vpop.f32.mrb[3].mxu0  ;;  %v562_v56 = vpop.f32.mrb[3].mxu1 }
  0xed   : > { %674 = vst.msk [vmem:[%s1266_s20 + $0x10] sm:$0xff] %vm671_vm1, %v442_v55  ;;  %698 = vst.msk [vmem:[%s1266_s20 + $0xd0] sm:$0xff] %vm671_vm1, %v562_v56 }
  0xef   : > { %v916_v57 = vpop.f32.mrb[4].mxu0  ;;  %v952_v58 = vpop.f32.mrb[4].mxu1 }
  0xf0   : > { %677 = vst.msk [vmem:[%s1266_s20 + $0x28] sm:$0xff] %vm671_vm1, %v916_v57  ;;  %701 = vst.msk [vmem:[%s1266_s20 + $0xe8] sm:$0xff] %vm671_vm1, %v952_v58  ;;  %v452_v59 = vpop.f32.mrb[5].mxu0  ;;  %v572_v60 = vpop.f32.mrb[5].mxu1 }
  0xf1   : > { %676 = vst.msk [vmem:[%s1266_s20 + $0x20] sm:$0xff] %vm671_vm1, %v452_v59  ;;  %700 = vst.msk [vmem:[%s1266_s20 + $0xe0] sm:$0xff] %vm671_vm1, %v572_v60 }
  0xf3   : > { %v919_v61 = vpop.f32.mrb[6].mxu0  ;;  %v955_v62 = vpop.f32.mrb[6].mxu1 }
  0xf4   : > { %679 = vst.msk [vmem:[%s1266_s20 + $0x38] sm:$0xff] %vm671_vm1, %v919_v61  ;;  %703 = vst.msk [vmem:[%s1266_s20 + $0xf8] sm:$0xff] %vm671_vm1, %v955_v62  ;;  %v462_v63 = vpop.f32.mrb[7].mxu0  ;;  %v582_v0 = vpop.f32.mrb[7].mxu1 }
  0xf5   : > { %678 = vst.msk [vmem:[%s1266_s20 + $0x30] sm:$0xff] %vm671_vm1, %v462_v63  ;;  %702 = vst.msk [vmem:[%s1266_s20 + $0xf0] sm:$0xff] %vm671_vm1, %v582_v0 }
  0xf7   : > { %v922_v1 = vpop.f32.mrb[8].mxu0  ;;  %v958_v2 = vpop.f32.mrb[8].mxu1 }
  0xf8   : > { %681 = vst.msk [vmem:[%s1266_s20 + $0x48] sm:$0xff] %vm671_vm1, %v922_v1  ;;  %705 = vst.msk [vmem:[%s1266_s20 + $0x108] sm:$0xff] %vm671_vm1, %v958_v2  ;;  %v472_v3 = vpop.f32.mrb[9].mxu0  ;;  %v592_v4 = vpop.f32.mrb[9].mxu1 }
  0xf9   : > { %680 = vst.msk [vmem:[%s1266_s20 + $0x40] sm:$0xff] %vm671_vm1, %v472_v3  ;;  %704 = vst.msk [vmem:[%s1266_s20 + $0x100] sm:$0xff] %vm671_vm1, %v592_v4 }
  0xfb   : > { %v925_v5 = vpop.f32.mrb[10].mxu0  ;;  %v961_v6 = vpop.f32.mrb[10].mxu1 }
  0xfc   : > { %683 = vst.msk [vmem:[%s1266_s20 + $0x58] sm:$0xff] %vm671_vm1, %v925_v5  ;;  %707 = vst.msk [vmem:[%s1266_s20 + $0x118] sm:$0xff] %vm671_vm1, %v961_v6  ;;  %v482_v7 = vpop.f32.mrb[11].mxu0  ;;  %v602_v8 = vpop.f32.mrb[11].mxu1 }
  0xfd   : > { %682 = vst.msk [vmem:[%s1266_s20 + $0x50] sm:$0xff] %vm671_vm1, %v482_v7  ;;  %706 = vst.msk [vmem:[%s1266_s20 + $0x110] sm:$0xff] %vm671_vm1, %v602_v8 }
  0xff   : > { %v928_v9 = vpop.f32.mrb[12].mxu0  ;;  %v964_v10 = vpop.f32.mrb[12].mxu1 }
 0x100   : > { %685 = vst.msk [vmem:[%s1266_s20 + $0x68] sm:$0xff] %vm671_vm1, %v928_v9  ;;  %709 = vst.msk [vmem:[%s1266_s20 + $0x128] sm:$0xff] %vm671_vm1, %v964_v10  ;;  %v492_v11 = vpop.f32.mrb[13].mxu0  ;;  %v612_v12 = vpop.f32.mrb[13].mxu1 }
 0x101   : > { %684 = vst.msk [vmem:[%s1266_s20 + $0x60] sm:$0xff] %vm671_vm1, %v492_v11  ;;  %708 = vst.msk [vmem:[%s1266_s20 + $0x120] sm:$0xff] %vm671_vm1, %v612_v12 }
 0x103   : > { %v931_v13 = vpop.f32.mrb[14].mxu0  ;;  %v967_v14 = vpop.f32.mrb[14].mxu1 }
 0x104   : > { %687 = vst.msk [vmem:[%s1266_s20 + $0x78] sm:$0xff] %vm671_vm1, %v931_v13  ;;  %711 = vst.msk [vmem:[%s1266_s20 + $0x138] sm:$0xff] %vm671_vm1, %v967_v14  ;;  %v502_v15 = vpop.f32.mrb[15].mxu0  ;;  %v622_v16 = vpop.f32.mrb[15].mxu1 }
 0x105   : > { %686 = vst.msk [vmem:[%s1266_s20 + $0x70] sm:$0xff] %vm671_vm1, %v502_v15  ;;  %710 = vst.msk [vmem:[%s1266_s20 + $0x130] sm:$0xff] %vm671_vm1, %v622_v16 }
 0x107   : > { %v934_v17 = vpop.f32.mrb[16].mxu0  ;;  %v970_v18 = vpop.f32.mrb[16].mxu1 }
 0x108   : > { %689 = vst.msk [vmem:[%s1266_s20 + $0x88] sm:$0xff] %vm671_vm1, %v934_v17  ;;  %713 = vst.msk [vmem:[%s1266_s20 + $0x148] sm:$0xff] %vm671_vm1, %v970_v18  ;;  %v512_v19 = vpop.f32.mrb[17].mxu0  ;;  %v632_v20 = vpop.f32.mrb[17].mxu1 }
 0x109   : > { %688 = vst.msk [vmem:[%s1266_s20 + $0x80] sm:$0xff] %vm671_vm1, %v512_v19  ;;  %712 = vst.msk [vmem:[%s1266_s20 + $0x140] sm:$0xff] %vm671_vm1, %v632_v20 }
 0x10b   : > { %v937_v21 = vpop.f32.mrb[18].mxu0  ;;  %v973_v22 = vpop.f32.mrb[18].mxu1 }
 0x10c   : > { %691 = vst.msk [vmem:[%s1266_s20 + $0x98] sm:$0xff] %vm671_vm1, %v937_v21  ;;  %715 = vst.msk [vmem:[%s1266_s20 + $0x158] sm:$0xff] %vm671_vm1, %v973_v22  ;;  %v522_v23 = vpop.f32.mrb[19].mxu0  ;;  %v642_v24 = vpop.f32.mrb[19].mxu1 }
 0x10d   : > { %690 = vst.msk [vmem:[%s1266_s20 + $0x90] sm:$0xff] %vm671_vm1, %v522_v23  ;;  %714 = vst.msk [vmem:[%s1266_s20 + $0x150] sm:$0xff] %vm671_vm1, %v642_v24 }
 0x10f   : > { %v940_v25 = vpop.f32.mrb[20].mxu0  ;;  %v976_v26 = vpop.f32.mrb[20].mxu1 }
 0x110   : > { %693 = vst.msk [vmem:[%s1266_s20 + $0xa8] sm:$0xff] %vm671_vm1, %v940_v25  ;;  %717 = vst.msk [vmem:[%s1266_s20 + $0x168] sm:$0xff] %vm671_vm1, %v976_v26  ;;  %v532_v27 = vpop.f32.mrb[21].mxu0  ;;  %v652_v28 = vpop.f32.mrb[21].mxu1 }
 0x111   : > { %692 = vst.msk [vmem:[%s1266_s20 + $0xa0] sm:$0xff] %vm671_vm1, %v532_v27  ;;  %716 = vst.msk [vmem:[%s1266_s20 + $0x160] sm:$0xff] %vm671_vm1, %v652_v28 }
 0x113   : > { %v943_v29 = vpop.f32.mrb[22].mxu0  ;;  %v979_v30 = vpop.f32.mrb[22].mxu1 }
 0x114   : > { %695 = vst.msk [vmem:[%s1266_s20 + $0xb8] sm:$0xff] %vm671_vm1, %v943_v29  ;;  %719 = vst.msk [vmem:[%s1266_s20 + $0x178] sm:$0xff] %vm671_vm1, %v979_v30  ;;  %v542_v31 = vpop.f32.mrb[23].mxu0  ;;  %v662_v32 = vpop.f32.mrb[23].mxu1 }
 0x115   : > { %694 = vst.msk [vmem:[%s1266_s20 + $0xb0] sm:$0xff] %vm671_vm1, %v542_v31  ;;  %718 = vst.msk [vmem:[%s1266_s20 + $0x170] sm:$0xff] %vm671_vm1, %v662_v32 }
 0x116 PF: > { %s12_s11 = sadd.s32 1, %s1029_s11   ;;  %s1376_s9 = smov %s1025_s10 }
 0x117   : > { %p9_p5 = scmp.ge.s32.totalorder %s12_s11, 4   ;;  %s1377_s10 = smov %s1379_s12 }
 0x119   :  { %11 = sbr.rel (!%p9_p5) target bundleno = 2 (0x2), region = 58 }

</bundles_post_ra>
